<compile_context>
chip_gen: v7x
topology: tpu7x:2x2x1
jax: 0.10.0
libtpu: 0.0.40
codegen_flags: <defaults>
</compile_context>

<pallas_src>
import functools

import jax
import jax.numpy as jnp
from jax.experimental import pallas as pl
from jax.experimental.pallas import tpu as pltpu

_LANE = 128      # vreg lane width
_SUBLANE = 8     # vreg sublane count


def _round_up(x, m):
    return ((x + m - 1) // m) * m


def _vmem_capacity_bytes():
    """Physical VMEM per TensorCore (v5e/v6e: 128 MiB, v7x: 64 MiB)."""
    try:
        info = pltpu.get_tpu_info()
        cap = int(getattr(info, "vmem_capacity_bytes", 0))
        if cap > 0:
            return cap
    except Exception:
        pass
    return 64 << 20  # conservative fallback (v7x per-TC)


# ----------------------------------------------------------------------------
# Fused Pallas kernel: one grid step == one MP_ClassLayer
# ----------------------------------------------------------------------------
def _fused_mp_class_kernel(*refs, n_proto, f_pad, has_context):
    """One MP_ClassLayer per grid step l = pl.program_id(0).

    Refs (in, out, scratch):
      x_ref      [N_pad, F]        padded input node features (resident)
      adj_ref    [N_pad, N_pad]    row-normalized dense adjacency (resident)
      (ctx_ref   [N_pad, F])       only when has_context (resident)
      protoT_ref [1, F, P*F]       this layer's -2*prototypes (col p*F+o)
      wT_ref     [1, F, P*F]       this layer's weights        (col p*F+o)
      b_ref      [1, 1, P*F]       this layer's bias
      psq_ref    [1, 1, P*F]       this layer's ||proto||^2
      out_ref    [N_pad, F]        this layer's output slab block
      h_ref      [N_pad, F]        VMEM scratch carrying h across layers
    """
    if has_context:
        (x_ref, adj_ref, ctx_ref, protoT_ref, wT_ref,
         b_ref, psq_ref, out_ref, h_ref) = refs
    else:
        (x_ref, adj_ref, protoT_ref, wT_ref,
         b_ref, psq_ref, out_ref, h_ref) = refs
        ctx_ref = None

    l = pl.program_id(0)

    @pl.when(l == 0)
    def _():
        h_ref[...] = x_ref[...]                      # h_0 = x

    h = h_ref[...]                                   # [N_pad, F]
    ctx = ctx_ref[...] if has_context else h
    adj = adj_ref[...]                               # [N_pad, N_pad]

    # 1) mean message passing over neighbors (+ self loop baked into adj)
    m = jnp.dot(adj, h, preferred_element_type=jnp.float32)            # [N, F]

    # 2) distances to ALL prototypes in one lane-stacked matmul.
    #    protoT already holds -2*proto, so d = ||proto||^2 - 2*ctx.proto.
    #    (||ctx||^2 is constant per node -> dropped, argmin unchanged.)
    cross = jnp.dot(ctx, protoT_ref[0],
                    preferred_element_type=jnp.float32)                # [N, P*F]
    d = psq_ref[0] + cross                                             # [N, P*F]

    # 3) gated readout for ALL prototypes in one lane-stacked matmul
    z = jnp.dot(m, wT_ref[0],
                preferred_element_type=jnp.float32) + b_ref[0]         # [N, P*F]

    # prototype argmin select per output neuron: static 128-lane slices (VPU)
    best_d = d[:, 0:f_pad]
    best_z = z[:, 0:f_pad]
    for p in range(1, n_proto):
        dp = d[:, p * f_pad:(p + 1) * f_pad]
        zp = z[:, p * f_pad:(p + 1) * f_pad]
        take = dp < best_d                           # strict <: first proto wins ties
        best_d = jnp.where(take, dp, best_d)
        best_z = jnp.where(take, zp, best_z)

    h_new = jax.nn.sigmoid(best_z)                   # [N, F]  (EUP)
    h_ref[...] = h_new                               # carry to next layer
    out_ref[...] = h_new                             # lane-dense 128-wide store


def _fused_forward(x_pad, adj_pad, ctx_pad, protoT_all, wT_all, b_all, psq_all,
                   n_layer, n_proto, f_pad):
    n_pad = x_pad.shape[0]
    F = f_pad
    P = n_proto
    has_context = ctx_pad is not None

    kernel = functools.partial(
        _fused_mp_class_kernel, n_proto=n_proto, f_pad=F,
        has_context=has_context)

    # Resident (constant index_map) inputs, then per-layer pipelined parameters.
    in_specs = [
        pl.BlockSpec((n_pad, F), lambda l: (0, 0)),            # x
        pl.BlockSpec((n_pad, n_pad), lambda l: (0, 0)),        # adj
    ]
    inputs = [x_pad, adj_pad]
    if has_context:
        in_specs.append(pl.BlockSpec((n_pad, F), lambda l: (0, 0)))
        inputs.append(ctx_pad)
    in_specs += [
        pl.BlockSpec((1, F, P * F), lambda l: (l, 0, 0)),      # protoT (-2*proto)
        pl.BlockSpec((1, F, P * F), lambda l: (l, 0, 0)),      # wT
        pl.BlockSpec((1, 1, P * F), lambda l: (l, 0, 0)),      # b
        pl.BlockSpec((1, 1, P * F), lambda l: (l, 0, 0)),      # psq
    ]
    inputs += [protoT_all, wT_all, b_all, psq_all]

    out_shape = jax.ShapeDtypeStruct((n_pad, n_layer * F), jnp.float32)
    out_spec = pl.BlockSpec((n_pad, F), lambda l: (0, l))

    # VMEM budget: double-buffered pipelined blocks + h scratch + compiler
    # headroom, clamped below the physical VMEM of this chip generation.
    blk_bytes = 4 * (n_pad * F                     # x
                     + n_pad * n_pad               # adj
                     + (n_pad * F if has_context else 0)
                     + 2 * F * P * F               # protoT + wT blocks (one layer)
                     + 2 * P * F                   # b + psq blocks (one layer)
                     + n_pad * F)                  # out block
    vmem_needed = 2 * blk_bytes + 4 * n_pad * F + (4 << 20)
    cap = _vmem_capacity_bytes() - (8 << 20)
    vmem_limit = int(min(max(vmem_needed, 16 << 20), cap))

    return pl.pallas_call(
        kernel,
        out_shape=out_shape,
        grid_spec=pltpu.PrefetchScalarGridSpec(
            num_scalar_prefetch=0,
            grid=(n_layer,),
            in_specs=in_specs,
            out_specs=out_spec,
            scratch_shapes=[pltpu.VMEM((n_pad, F), jnp.float32)]),
        compiler_params=pltpu.CompilerParams(
            dimension_semantics=("arbitrary",),     # layer l+1 depends on layer l
            vmem_limit_bytes=vmem_limit),
    )(*inputs)


# ----------------------------------------------------------------------------
# Network: parameter construction (pre-transposed / padded / stacked) + glue
# ----------------------------------------------------------------------------
class MPClassNetworkPallas:
    def __init__(self, in_channels, n_neuron, context_dim, n_prototypes,
                 n_layer, key, input_as_context=False):
        self.in_channels = in_channels
        self.n_neuron = n_neuron
        self.n_prototypes = n_prototypes
        self.context_dim = context_dim
        self.n_layer = n_layer
        self._adj_cache = None

        # (in, out, ctx) per layer -- mirrors MPClassNetwork.__init__
        dims = [(in_channels, n_neuron[0], context_dim)]
        for i in range(1, n_layer - 1):
            ctx = n_neuron[i - 1] if not input_as_context else in_channels
            dims.append((n_neuron[i - 1], n_neuron[i], ctx))
        last_ctx = n_neuron[-1] if not input_as_context else in_channels
        dims.append((n_neuron[-1], 1, last_ctx))
        self.dims = dims

        f_real = max([in_channels, context_dim, 1] + list(n_neuron))
        self.f_pad = _round_up(f_real, _LANE)
        F = self.f_pad
        P = n_prototypes

        self.raw_params = []                    # kept for the pure-JAX reference
        protoT_list, wT_list, b_list, psq_list = [], [], [], []
        for (cin, cout, cctx) in dims:
            key, k1, k2, k3 = jax.random.split(key, 4)
            proto = 0.5 * jax.random.normal(k1, (cout, P, cctx), jnp.float32)
            w = 0.1 * jax.random.normal(k2, (cout, P, cin), jnp.float32)
            b = 0.1 * jax.random.normal(k3, (cout, P), jnp.float32)
            self.raw_params.append((proto, w, b))

            # built ONCE: transposed, zero-padded, prototype-stacked layouts.
            # The -2 of the squared-distance expansion is folded in here.
            pT = jnp.transpose(-2.0 * proto, (1, 2, 0))                # [P, D, O]
            pT = jnp.pad(pT, ((0, 0), (0, F - cctx), (0, F - cout)))
            protoT_list.append(
                jnp.transpose(pT, (1, 0, 2)).reshape(F, P * F))        # [F, P*F]

            wT = jnp.transpose(w, (1, 2, 0))                           # [P, Cin, O]
            wT = jnp.pad(wT, ((0, 0), (0, F - cin), (0, F - cout)))
            wT_list.append(
                jnp.transpose(wT, (1, 0, 2)).reshape(F, P * F))        # [F, P*F]

            b_pad = jnp.pad(b, ((0, F - cout), (0, 0)))                # [F, P]
            b_list.append(jnp.transpose(b_pad, (1, 0)).reshape(1, P * F))

            psq = jnp.sum(proto * proto, axis=-1)                      # [O, P]
            psq = jnp.pad(psq, ((0, F - cout), (0, 0)))                # [F, P]
            psq_list.append(jnp.transpose(psq, (1, 0)).reshape(1, P * F))

        self.protoT_all = jnp.stack(protoT_list)   # [L, F, P*F]
        self.wT_all = jnp.stack(wT_list)           # [L, F, P*F]
        self.b_all = jnp.stack(b_list)             # [L, 1, P*F]
        self.psq_all = jnp.stack(psq_list)         # [L, 1, P*F]

    @staticmethod
    def build_adjacency(edge_index, num_nodes):
        """Dense row-normalized adjacency with self loops (mean aggregation)."""
        src, dst = edge_index[0], edge_index[1]
        adj = jnp.zeros((num_nodes, num_nodes), jnp.float32)
        adj = adj.at[dst, src].add(1.0)            # counts duplicate edges
        # TODO(synk): exact self-loop / normalization convention of MP_ClassLayer
        #             unavailable; mean aggregation with added self loops assumed.
        adj = adj + jnp.eye(num_nodes, dtype=jnp.float32)
        deg = jnp.maximum(jnp.sum(adj, axis=1, keepdims=True), 1.0)
        return adj / deg

    def forward(self, x, edge_index, context=None):
        n = x.shape[0]
        n_pad = _round_up(n, _SUBLANE)
        F = self.f_pad

        # Adjacency is a pure function of (edge_index, n): cache the padded,
        # normalized matrix so repeated forward calls with the same graph (the
        # common case) skip the host-side scatter-add / normalize / pad.
        cache_key = (id(edge_index), int(n), int(n_pad))
        if self._adj_cache is None or self._adj_cache[0] != cache_key:
            adj = self.build_adjacency(edge_index, n)
            adj_pad = jnp.pad(adj, ((0, n_pad - n), (0, n_pad - n)))
            self._adj_cache = (cache_key, adj_pad)
        adj_pad = self._adj_cache[1]

        x_pad = jnp.pad(x.astype(jnp.float32),
                        ((0, n_pad - n), (0, F - x.shape[1])))
        ctx_pad = None
        if context is not None:
            ctx = context.astype(jnp.float32)
            ctx_pad = jnp.pad(ctx, ((0, n_pad - n), (0, F - ctx.shape[1])))

        out_slab = _fused_forward(
            x_pad, adj_pad, ctx_pad, self.protoT_all, self.wT_all,
            self.b_all, self.psq_all, self.n_layer, self.n_prototypes, F)

        layer_classification = []
        for l, (_, cout, _) in enumerate(self.dims):
            layer_classification.append(out_slab[:n, l * F:l * F + cout])
        return layer_classification, layer_classification[-1]


# ----------------------------------------------------------------------------
# Pure-JAX reference (unpadded, per-layer) for in-script validation
# ----------------------------------------------------------------------------
def reference_forward(x, adj, raw_params, context=None):
    h = x.astype(jnp.float32)
    outs = []
    for (proto, w, b) in raw_params:           # proto [O,P,D], w [O,P,Cin], b [O,P]
        ctx = h if context is None else context
        m = adj @ h
        diff = ctx[:, None, None, :] - proto[None, :, :, :]       # [N, O, P, D]
        d = jnp.sum(diff * diff, axis=-1)                          # [N, O, P]
        pstar = jnp.argmin(d, axis=-1)                             # [N, O]
        o_idx = jnp.arange(proto.shape[0])[None, :]
        w_sel = w[o_idx, pstar]                                    # [N, O, Cin]
        b_sel = b[o_idx, pstar]                                    # [N, O]
        z = jnp.einsum('nc,noc->no', m, w_sel) + b_sel
        h = jax.nn.sigmoid(z)
        outs.append(h)
    return outs, h


# ----------------------------------------------------------------------------
# Demo
# ----------------------------------------------------------------------------
if __name__ == "__main__":
    key = jax.random.PRNGKey(0)

    # small graph: 16 nodes, 8 input features, 40 random directed edges
    N, C_IN, E = 16, 8, 40
    n_neuron = [32, 32]
    n_layer = 3
    n_prototypes = 4
    context_dim = C_IN   # forward is called with context=None -> context == h

    kx, ke, kp = jax.random.split(key, 3)
    x = jax.random.normal(kx, (N, C_IN), dtype=jnp.float32)
    edge_index = jax.random.randint(ke, (2, E), 0, N, dtype=jnp.int32)

    net = MPClassNetworkPallas(
        in_channels=C_IN,
        n_neuron=n_neuron,
        context_dim=context_dim,
        n_prototypes=n_prototypes,
        n_layer=n_layer,
        key=kp,
    )

    layer_outputs, h_final = net.forward(x, edge_index, context=None)
    jax.block_until_ready(h_final)

    assert h_final.shape == (N, 1)
    assert layer_outputs[0].shape == (N, n_neuron[0])
    assert layer_outputs[1].shape == (N, n_neuron[1])
    assert bool(jnp.all(jnp.isfinite(h_final)))

    # second call exercises the cached-adjacency path
    layer_outputs2, h_final2 = net.forward(x, edge_index, context=None)
    jax.block_until_ready(h_final2)
    assert bool(jnp.allclose(h_final, h_final2))

    # validate fused/padded/pipelined kernel against the plain-JAX reference
    adj_ref = MPClassNetworkPallas.build_adjacency(edge_index, N)
    ref_outs, ref_final = reference_forward(x, adj_ref, net.raw_params, None)
    for got, want in zip(layer_outputs, ref_outs):
        assert bool(jnp.allclose(got, want, rtol=1e-4, atol=1e-5)), "mismatch"
    assert bool(jnp.allclose(h_final, ref_final, rtol=1e-4, atol=1e-5))

    print("KERNEL_OK")
</pallas_src>

<mosaic_0001>
module attributes {stable_mosaic.version = 11 : i64} {
  func.func @_fused_mp_class_kernel(%arg0: i32, %arg1: memref<16x128xf32, #tpu.memory_space<vmem>>, %arg2: memref<16x16xf32, #tpu.memory_space<vmem>>, %arg3: memref<1x128x512xf32, #tpu.memory_space<vmem>>, %arg4: memref<1x128x512xf32, #tpu.memory_space<vmem>>, %arg5: memref<1x1x512xf32, #tpu.memory_space<vmem>>, %arg6: memref<1x1x512xf32, #tpu.memory_space<vmem>>, %arg7: memref<16x128xf32, #tpu.memory_space<vmem>>, %arg8: memref<16x128xf32, #tpu.memory_space<vmem>>) attributes {dimension_semantics = [#tpu.dimension_semantics<arbitrary>], iteration_bounds = array<i64: 3>, scalar_prefetch = 0 : i64, scratch_operands = 1 : i64, tpu.core_type = #tpu.core_type<tc>, window_params = [{pipeline_mode = #tpu.pipeline_mode<synchronous>, transform_indices = @transform_0, window_bounds = array<i64: 16, 128>}, {pipeline_mode = #tpu.pipeline_mode<synchronous>, transform_indices = @transform_1, window_bounds = array<i64: 16, 16>}, {transform_indices = @transform_2, window_bounds = array<i64: 1, 128, 512>}, {transform_indices = @transform_3, window_bounds = array<i64: 1, 128, 512>}, {transform_indices = @transform_4, window_bounds = array<i64: 1, 1, 512>}, {transform_indices = @transform_5, window_bounds = array<i64: 1, 1, 512>}, {transform_indices = @transform_6, window_bounds = array<i64: 16, 128>}]} {
    %c0_i32 = arith.constant 0 : i32
    %0 = arith.cmpi eq, %arg0, %c0_i32 : i32
    %1 = arith.extui %0 : i1 to i32
    %c0_i32_0 = arith.constant 0 : i32
    %2 = arith.cmpi ne, %1, %c0_i32_0 : i32
    scf.if %2 {
      %c0_23 = arith.constant 0 : index
      %c0_24 = arith.constant 0 : index
      %43 = vector.load %arg1[%c0_23, %c0_24] : memref<16x128xf32, #tpu.memory_space<vmem>>, vector<16x128xf32>
      %c0_25 = arith.constant 0 : index
      %c0_26 = arith.constant 0 : index
      %44 = vector.load %arg8[%c0_25, %c0_26] : memref<16x128xf32, #tpu.memory_space<vmem>>, vector<16x128xf32>
      tpu.vector_store %arg8[%c0_25, %c0_26], %43 {strides = array<i32>} : memref<16x128xf32, #tpu.memory_space<vmem>>, vector<16x128xf32>,
    } else {
    }
    %c0 = arith.constant 0 : index
    %c0_1 = arith.constant 0 : index
    %3 = vector.load %arg8[%c0, %c0_1] : memref<16x128xf32, #tpu.memory_space<vmem>>, vector<16x128xf32>
    %c0_2 = arith.constant 0 : index
    %c0_3 = arith.constant 0 : index
    %4 = vector.load %arg2[%c0_2, %c0_3] : memref<16x16xf32, #tpu.memory_space<vmem>>, vector<16x16xf32>
    %cst = arith.constant dense<0.000000e+00> : vector<16x128xf32>
    %5 = tpu.matmul %4, %3, %cst {dimension_numbers = #tpu.dot_dimension_numbers<[1], [0], [0], [1], [0, 0, 1, 1], [], []>} : vector<16x16xf32>, vector<16x128xf32>, vector<16x128xf32> -> vector<16x128xf32>
    %c0_4 = arith.constant 0 : index
    %c0_5 = arith.constant 0 : index
    %c0_6 = arith.constant 0 : index
    %6 = vector.load %arg3[%c0_4, %c0_5, %c0_6] : memref<1x128x512xf32, #tpu.memory_space<vmem>>, vector<1x128x512xf32>
    %7 = vector.shape_cast %6 : vector<1x128x512xf32> to vector<128x512xf32>
    %cst_7 = arith.constant dense<0.000000e+00> : vector<16x512xf32>
    %8 = tpu.matmul %3, %7, %cst_7 {dimension_numbers = #tpu.dot_dimension_numbers<[1], [0], [0], [1], [0, 0, 1, 1], [], []>} : vector<16x128xf32>, vector<128x512xf32>, vector<16x512xf32> -> vector<16x512xf32>
    %c0_8 = arith.constant 0 : index
    %c0_9 = arith.constant 0 : index
    %c0_10 = arith.constant 0 : index
    %9 = vector.load %arg6[%c0_8, %c0_9, %c0_10] : memref<1x1x512xf32, #tpu.memory_space<vmem>>, vector<1x1x512xf32>
    %10 = vector.shape_cast %9 : vector<1x1x512xf32> to vector<1x512xf32>
    %11 = vector.broadcast %10 : vector<1x512xf32> to vector<16x512xf32>
    %12 = arith.addf %11, %8 : vector<16x512xf32>
    %c0_11 = arith.constant 0 : index
    %c0_12 = arith.constant 0 : index
    %c0_13 = arith.constant 0 : index
    %13 = vector.load %arg4[%c0_11, %c0_12, %c0_13] : memref<1x128x512xf32, #tpu.memory_space<vmem>>, vector<1x128x512xf32>
    %14 = vector.shape_cast %13 : vector<1x128x512xf32> to vector<128x512xf32>
    %cst_14 = arith.constant dense<0.000000e+00> : vector<16x512xf32>
    %15 = tpu.matmul %5, %14, %cst_14 {dimension_numbers = #tpu.dot_dimension_numbers<[1], [0], [0], [1], [0, 0, 1, 1], [], []>} : vector<16x128xf32>, vector<128x512xf32>, vector<16x512xf32> -> vector<16x512xf32>
    %c0_15 = arith.constant 0 : index
    %c0_16 = arith.constant 0 : index
    %c0_17 = arith.constant 0 : index
    %16 = vector.load %arg5[%c0_15, %c0_16, %c0_17] : memref<1x1x512xf32, #tpu.memory_space<vmem>>, vector<1x1x512xf32>
    %17 = vector.shape_cast %16 : vector<1x1x512xf32> to vector<1x512xf32>
    %18 = vector.broadcast %17 : vector<1x512xf32> to vector<16x512xf32>
    %19 = arith.addf %15, %18 : vector<16x512xf32>
    %20 = vector.extract_strided_slice %12 {offsets = [0, 0], sizes = [16, 128], strides = [1, 1]} : vector<16x512xf32> to vector<16x128xf32>
    %21 = vector.extract_strided_slice %19 {offsets = [0, 0], sizes = [16, 128], strides = [1, 1]} : vector<16x512xf32> to vector<16x128xf32>
    %22 = vector.extract_strided_slice %12 {offsets = [0, 128], sizes = [16, 128], strides = [1, 1]} : vector<16x512xf32> to vector<16x128xf32>
    %23 = vector.extract_strided_slice %19 {offsets = [0, 128], sizes = [16, 128], strides = [1, 1]} : vector<16x512xf32> to vector<16x128xf32>
    %24 = arith.cmpf olt, %22, %20 : vector<16x128xf32>
    %25 = arith.select %24, %22, %20 : vector<16x128xi1>, vector<16x128xf32>
    %26 = arith.select %24, %23, %21 : vector<16x128xi1>, vector<16x128xf32>
    %27 = vector.extract_strided_slice %12 {offsets = [0, 256], sizes = [16, 128], strides = [1, 1]} : vector<16x512xf32> to vector<16x128xf32>
    %28 = vector.extract_strided_slice %19 {offsets = [0, 256], sizes = [16, 128], strides = [1, 1]} : vector<16x512xf32> to vector<16x128xf32>
    %29 = arith.cmpf olt, %27, %25 : vector<16x128xf32>
    %30 = arith.select %29, %27, %25 : vector<16x128xi1>, vector<16x128xf32>
    %31 = arith.select %29, %28, %26 : vector<16x128xi1>, vector<16x128xf32>
    %32 = vector.extract_strided_slice %12 {offsets = [0, 384], sizes = [16, 128], strides = [1, 1]} : vector<16x512xf32> to vector<16x128xf32>
    %33 = vector.extract_strided_slice %19 {offsets = [0, 384], sizes = [16, 128], strides = [1, 1]} : vector<16x512xf32> to vector<16x128xf32>
    %34 = arith.cmpf olt, %32, %30 : vector<16x128xf32>
    %35 = arith.select %34, %33, %31 : vector<16x128xi1>, vector<16x128xf32>
    %36 = arith.negf %35 : vector<16x128xf32>
    %37 = math.exp %36 : vector<16x128xf32>
    %cst_18 = arith.constant 1.000000e+00 : f32
    %38 = vector.broadcast %cst_18 : f32 to vector<16x128xf32>
    %39 = arith.addf %38, %37 : vector<16x128xf32>
    %40 = arith.divf %38, %39 : vector<16x128xf32>
    %c0_19 = arith.constant 0 : index
    %c0_20 = arith.constant 0 : index
    %41 = vector.load %arg8[%c0_19, %c0_20] : memref<16x128xf32, #tpu.memory_space<vmem>>, vector<16x128xf32>
    tpu.vector_store %arg8[%c0_19, %c0_20], %40 {strides = array<i32>} : memref<16x128xf32, #tpu.memory_space<vmem>>, vector<16x128xf32>,
    %c0_21 = arith.constant 0 : index
    %c0_22 = arith.constant 0 : index
    %42 = vector.load %arg7[%c0_21, %c0_22] : memref<16x128xf32, #tpu.memory_space<vmem>>, vector<16x128xf32>
    tpu.vector_store %arg7[%c0_21, %c0_22], %40 {strides = array<i32>} : memref<16x128xf32, #tpu.memory_space<vmem>>, vector<16x128xf32>,
    return
  }
  func.func @transform_0(%arg0: i32) -> (i32, i32) {
    %c0_i32 = arith.constant 0 : i32
    %c0_i32_0 = arith.constant 0 : i32
    %c0_i32_1 = arith.constant 0 : i32
    return %c0_i32, %c0_i32_0 : i32, i32
  }
  func.func @transform_1(%arg0: i32) -> (i32, i32) {
    %c0_i32 = arith.constant 0 : i32
    %c0_i32_0 = arith.constant 0 : i32
    %c0_i32_1 = arith.constant 0 : i32
    return %c0_i32, %c0_i32_0 : i32, i32
  }
  func.func @transform_2(%arg0: i32) -> (i32, i32, i32) {
    %c0_i32 = arith.constant 0 : i32
    %c0_i32_0 = arith.constant 0 : i32
    %c0_i32_1 = arith.constant 0 : i32
    return %arg0, %c0_i32, %c0_i32_0 : i32, i32, i32
  }
  func.func @transform_3(%arg0: i32) -> (i32, i32, i32) {
    %c0_i32 = arith.constant 0 : i32
    %c0_i32_0 = arith.constant 0 : i32
    %c0_i32_1 = arith.constant 0 : i32
    return %arg0, %c0_i32, %c0_i32_0 : i32, i32, i32
  }
  func.func @transform_4(%arg0: i32) -> (i32, i32, i32) {
    %c0_i32 = arith.constant 0 : i32
    %c0_i32_0 = arith.constant 0 : i32
    %c0_i32_1 = arith.constant 0 : i32
    return %arg0, %c0_i32, %c0_i32_0 : i32, i32, i32
  }
  func.func @transform_5(%arg0: i32) -> (i32, i32, i32) {
    %c0_i32 = arith.constant 0 : i32
    %c0_i32_0 = arith.constant 0 : i32
    %c0_i32_1 = arith.constant 0 : i32
    return %arg0, %c0_i32, %c0_i32_0 : i32, i32, i32
  }
  func.func @transform_6(%arg0: i32) -> (i32, i32) {
    %c0_i32 = arith.constant 0 : i32
    %c0_i32_0 = arith.constant 0 : i32
    return %c0_i32, %arg0 : i32, i32
  }
}

</mosaic_0001>

<bundles_post_ra>
// kernel: tpu_custom_call.1
= control target key start
LH: loop header
LB: loop body
LE: loop exit
PB: predicated region body
PF: predicated region fallthrough
CT: control target
= control target key end

     0   :  { %s2182_s0 = inlined_call_operand.hbm [shape: f32[16,128], index: 0, kind: input, shape index: {}]   ;;  %s2183_s1 = inlined_call_operand.hbm [shape: f32[16,16], index: 1, kind: input, shape index: {}]   ;;  %s2184_s2 = inlined_call_operand.hbm [shape: f32[3,128,512], index: 2, kind: input, shape index: {}]   ;;  %s2185_s3 = inlined_call_operand.hbm [shape: f32[3,128,512], index: 3, kind: input, shape index: {}]   ;;  %s2186_s4 = inlined_call_operand.vmem [shape: f32[3,1,512], index: 4, kind: input, shape index: {}]   ;;  %s2187_s5 = inlined_call_operand.hbm [shape: f32[3,1,512], index: 5, kind: input, shape index: {}]   ;;  %s2188_s6 = inlined_call_operand.hbm [shape: f32[16,384], index: 6, kind: output, shape index: {}]  }
   0x1   :  { %2206 = sst [smem:[#allocation19_spill]] %s2182_s0 }
   0x2   :  { %2207 = sst [smem:[#allocation20_spill]] %s2184_s2 }
   0x3   :  { %2208 = sst [smem:[#allocation21_spill]] %s2185_s3 }
   0x4   :  { %11 = vsyncpa [#allocation4], 0 }
   0x5   :  { %12 = vsyncpa [#allocation7], 0 }
   0x6   :  { %13 = vsyncpa [#allocation5], 0 }
   0x7   :  { %15 = vsyncpa [#allocation5 + $0x1], 0  ;;  %s1698_s21 = smov 0   ;;  %s1700_s22 = smov 0  }
   0x8   :  { %s1702_s23 = smov 0   ;;  %s1704_s24 = smov 0  }
   0x9 LB: > { %s1719_s25 = sadd.s32 4294967295, %s1647_s24   ;;  %s1157_s26 = sadd.s32 4294967294, %s1647_s24   ;;  %s1647_s24 = sphi %s1704_s24, %s2244_s24   ;;  %s1643_s23 = sphi %s1702_s23, %s2248_s23   ;;  %s1639_s22 = sphi %s1700_s22, %s2247_s22   ;;  %s1635_s21 = sphi %s1698_s21, %s2246_s21  }
   0xa   : > { %s1723_s27 = sadd.s32 1, %s1647_s24   ;;  %s70_s28 = sadd.s32 1, %s1643_s23 }
   0xb   : > { %2209 = sst [smem:[#allocation16_spill]] %s1723_s27  ;;  %s67_s29 = ssub.s32 %s1647_s24, %s1723_s27 }
   0xc   : > { %p77_p0 = scmp.ne.s32.totalorder %s1643_s23, %s1639_s22  ;;  %p68_p1 = scmp.eq.s32.totalorder %s67_s29, 0 }
   0xd   : > { %p78_p2 = scmp.eq.s32.totalorder %s1647_s24, 0  ;;  %p83_p3 = scmp.ne.s32.totalorder %s1639_s22, %s1635_s21 }
   0xe   : > { %p2189_p4 = scmp.eq.s32.totalorder %s1719_s25, 0  ;;  %p185_p7 = scmp.eq.s32.totalorder %s1719_s25, 2 }
   0xf   : > { %s1735_s30 = scalar_select %p68_p1, %s1643_s23, %s70_s28  }
  0x10   : > { %p1737_p5 = por %p78_p2, %p77_p0  ;;  %p1743_p6 = por %p2189_p4, %p83_p3 }
  0x11   : > { %2210 = sst [smem:[#allocation17_spill]] %s1735_s30  ;;  %p191_p8 = scmp.eq.s32.totalorder %s1157_s26, 2 }
  0x12   : > { %s2211_s7 = scalar_select %p1737_p5, 1, 0 }
  0x13   : > { %s2212_s8 = scalar_select %p1743_p6, 1, 0 }
  0x14   : > { %p1158_p9 = scmp.ge.s32.totalorder %s1647_s24, 1  ;;  %p198_p10 = scmp.lt.s32.totalorder %s1647_s24, 4 }
  0x15   : > { %p1750_p11 = por %p185_p7, %p77_p0  ;;  %p1754_p12 = por %p191_p8, %p83_p3 }
  0x16   : > { %p1758_p13 = pnand %p1158_p9, %p198_p10  ;;  %s1649_s12 = smov [#allocation3]  }
  0x17   : > { %s2213_s9 = scalar_select %p1750_p11, 1, 0 }
  0x18   : > { %s2214_s10 = scalar_select %p1754_p12, 1, 0 }
  0x19   : > { %s2216_s11 = scalar_select %p1758_p13, 1, 0 }
  0x1a   : > { %2215 = sst [smem:[#allocation18_spill]] %s2214_s10  ;;  %p1350_p2 = pneg %p1758_p13 }
  0x1b   : > { %s210_s13 = sshll.u32 %s1649_s12, 4  ;;  %s237_s15 = sand.u32 1, %s1647_s24   ;;  %s211_s13 = int_to_ptr.vmem [resolvable:$true] %s210_s13 }
  0x1c   : > { %p1767_p0 = pnand %p1350_p2, %p2189_p4  ;;  %s2218_s0 = sld [smem:[#allocation19_spill]] }
  0x1e   : > { %s2217_s14 = scalar_select %p1767_p0, 1, 0 }
  0x1f   : > { %p2198_p8 = pneg %p1767_p0 }
  0x22   : > { %s1427_s18 = scalar_lea.hbm %s2218_s0, 256 }
  0x23   : > { %p1428_p7 = scmp.ne.s32.totalorder %s2218_s0, %s1427_s18  ;;  %p1434_p2 = scmp.lt.u32.totalorder %s1427_s18, %s2218_s0 }
  0x25   : > { %p1430_p9 = pnand %p2198_p8, %p1428_p7 }
  0x27   : > { %p1431_p10 = pneg %p1430_p9 }
  0x29   : > { %p1436_p1 = pnand %p1434_p2, %p1431_p10 }
  0x2b   : > { %1439 = shalt.err (!%p1436_p1)
}
  0x2c   : > { %s1440_s29 = scalar_lea.vmem %s211_s13, 256  ;;  %p1448_p11 = scmp.lt.s32.totalorder %s211_s13, %s211_s13 }
  0x2d   : > { %p1441_p4 = scmp.ne.s32.totalorder %s211_s13, %s1440_s29  ;;  %p1449_p6 = scmp.lt.s32.totalorder %s1440_s29, %s1440_s29 }
  0x2f   : > { %p1443_p3 = pnand %p1441_p4, %p2198_p8  ;;  %p1450_p13 = por %p1449_p6, %p1448_p11 }
  0x31   : > { %p1444_p12 = pneg %p1443_p3 }
  0x33   : > { %p1451_p5 = pnand %p1450_p13, %p1444_p12 }
  0x35   : > { %1454 = shalt.err (!%p1451_p5)
}
  0x36   : > { %s2195_s12 = smov 128   ;;  %s2196_s16 = smov 8  }
  0x37   : > { %1353 = dma.hbm_to_vmem [thread:$0]  (!%p1767_p0), %s2218_s0, 256, %s211_s13, [#allocation4], %s2195_s12, %s2195_s12, %s2196_s16  }
  0x38   : > { %p2219_p4 = scmp.ne.s32.totalorder %s2211_s7, 0  ;;  %p2220_p6 = scmp.lt.s32.totalorder %s1647_s24, 3 }
  0x39   : > { %s2197_s20 = sand.u32 1, %s1643_s23   ;;  %s1188_s28 = sshll.u32 %s1647_s24, 13 }
  0x3a   : > { %p1802_p5 = pnand %p2220_p6, %p2219_p4  ;;  %s1809_s26 = sshll.u32 %s2197_s20, 9 }
  0x3b   : > { %s2222_s2 = sld [smem:[#allocation20_spill]]  ;;  %s241_s7 = scalar_lea.vmem [#allocation8], %s1809_s26 }
  0x3c   : > { %s2221_s19 = scalar_select %p1802_p5, 1, 0 }
  0x3d   : > { %s248_s13 = sshll.u32 %s241_s7, 4  ;;  %s1822_s17 = scalar_lea.sflag [#allocation4], %s237_s15  ;;  %s1820_s13 = int_to_ptr.vmem [resolvable:$true] %s248_s13 }
  0x3e   : > { %p1828_p12 = pneg %p1802_p5 }
  0x40   : > { %s2223_s12 = scalar_select %p1828_p12, 1, 0 }
  0x41   : > { %s1817_s27 = scalar_lea.hbm %s2222_s2, %s1188_s28  ;;  %s1460_s16 = scalar_lea.hbm %s2222_s2, 24576 }
  0x42   : > { %s1455_s18 = scalar_lea.hbm %s1817_s27, 8192  ;;  %p1461_p3 = scmp.lt.u32.totalorder %s1817_s27, %s2222_s2 }
  0x43   : > { %p1456_p11 = scmp.ne.s32.totalorder %s1817_s27, %s1455_s18  ;;  %p1462_p7 = scmp.lt.u32.totalorder %s1460_s16, %s1455_s18 }
  0x44   : > { %p1464_p10 = scmp.lt.u32.totalorder %s1455_s18, %s1817_s27 }
  0x45   : > { %p1458_p13 = pnand %p1828_p12, %p1456_p11  ;;  %p1463_p9 = por %p1462_p7, %p1461_p3 }
  0x47   : > { %p1459_p1 = pneg %p1458_p13  ;;  %p1465_p2 = por %p1464_p10, %p1463_p9 }
  0x49   : > { %p1466_p4 = pnand %p1465_p2, %p1459_p1 }
  0x4b   : > { %1469 = shalt.err (!%p1466_p4)
}
  0x4c   : > { %s1470_s15 = scalar_lea.vmem %s1820_s13, 8192  ;;  %s1652_s30 = smov [#allocation8]  }
  0x4d   : > { %p1471_p6 = scmp.ne.s32.totalorder %s1820_s13, %s1470_s15  ;;  %s1475_s29 = sshll.u32 %s1652_s30, 4  ;;  %s1476_s29 = int_to_ptr.vmem [resolvable:$false] %s1475_s29 }
  0x4e   : > { %s1477_s20 = scalar_lea.vmem %s1476_s29, 16384  ;;  %p1478_p8 = scmp.lt.s32.totalorder %s1820_s13, %s1476_s29 }
  0x4f   : > { %p1473_p11 = pnand %p1471_p6, %p1828_p12  ;;  %p1479_p0 = scmp.lt.s32.totalorder %s1477_s20, %s1470_s15 }
  0x51   : > { %p1474_p13 = pneg %p1473_p11  ;;  %p1480_p3 = por %p1479_p0, %p1478_p8 }
  0x53   : > { %p1481_p7 = pnand %p1480_p3, %p1474_p13 }
  0x55   : > { %1484 = shalt.err (!%p1481_p7)
}
  0x56   : > { %s2201_s16 = smov 512   ;;  %s1654_s18 = smov 32  }
  0x57   : > { %1360 = dma.hbm_to_vmem [thread:$0]  (!%p1802_p5), %s1817_s27, 8192, %s1820_s13, %s1822_s17, %s2201_s16, %s2201_s16, %s1654_s18  }
  0x58   : > { %s2224_s3 = sld [smem:[#allocation21_spill]]  ;;  %s262_s29 = scalar_lea.vmem [#allocation9], %s1809_s26 }
  0x59   : > { %s269_s20 = sshll.u32 %s262_s29, 4  ;;  %s1863_s20 = int_to_ptr.vmem [resolvable:$true] %s269_s20 }
  0x5e   : > { %s1860_s30 = scalar_lea.hbm %s2224_s3, %s1188_s28  ;;  %s1490_s16 = scalar_lea.hbm %s2224_s3, 24576 }
  0x5f   : > { %s1485_s0 = scalar_lea.hbm %s1860_s30, 8192  ;;  %p1491_p9 = scmp.lt.u32.totalorder %s1860_s30, %s2224_s3 }
  0x60   : > { %p1486_p0 = scmp.ne.s32.totalorder %s1860_s30, %s1485_s0  ;;  %p1492_p10 = scmp.lt.u32.totalorder %s1490_s16, %s1485_s0 }
  0x61   : > { %p1494_p4 = scmp.lt.u32.totalorder %s1485_s0, %s1860_s30 }
  0x62   : > { %p1488_p8 = pnand %p1486_p0, %p1828_p12  ;;  %p1493_p2 = por %p1492_p10, %p1491_p9 }
  0x64   : > { %p1489_p1 = pneg %p1488_p8  ;;  %p1495_p6 = por %p1494_p4, %p1493_p2 }
  0x66   : > { %p1496_p11 = pnand %p1495_p6, %p1489_p1 }
  0x68   : > { %1499 = shalt.err (!%p1496_p11)
}
  0x69   : > { %s1500_s26 = scalar_lea.vmem %s1863_s20, 8192  ;;  %s1655_s15 = smov [#allocation9]  }
  0x6a   : > { %p1501_p13 = scmp.ne.s32.totalorder %s1863_s20, %s1500_s26  ;;  %s1505_s29 = sshll.u32 %s1655_s15, 4  ;;  %s1506_s29 = int_to_ptr.vmem [resolvable:$false] %s1505_s29 }
  0x6b   : > { %s1507_s27 = scalar_lea.vmem %s1506_s29, 16384  ;;  %p1508_p0 = scmp.lt.s32.totalorder %s1863_s20, %s1506_s29 }
  0x6c   : > { %p1503_p3 = pnand %p1501_p13, %p1828_p12  ;;  %p1509_p8 = scmp.lt.s32.totalorder %s1507_s27, %s1500_s26 }
  0x6e   : > { %p1504_p7 = pneg %p1503_p3  ;;  %p1510_p9 = por %p1509_p8, %p1508_p0 }
  0x70   : > { %p1511_p10 = pnand %p1510_p9, %p1504_p7 }
  0x72   : > { %1514 = shalt.err (!%p1511_p10)
}
  0x73   : > { %s2225_s0 = smov 512   ;;  %s1656_s16 = smov [#allocation6]  }
  0x74   : > { %1363 = dma.hbm_to_vmem [thread:$0]  (!%p1802_p5), %s1860_s30, 8192, %s1863_s20, %s1822_s17, %s2225_s0, %s2225_s0, %s1654_s18  }
  0x75   : > { %s223_s13 = sshll.u32 %s1656_s16, 4  ;;  %s2226_s7 = sand.u32 1, %s1643_s23   ;;  %s224_s13 = int_to_ptr.vmem [resolvable:$true] %s223_s13 }
  0x76   : > { %s1168_s28 = sshll.u32 %s2226_s7, 2  ;;  %s1515_s29 = scalar_lea.hbm %s2183_s1, 256 }
  0x77   : > { %p1516_p1 = scmp.ne.s32.totalorder %s2183_s1, %s1515_s29  ;;  %p2227_p2 = scmp.ne.s32.totalorder %s2217_s14, 0 }
  0x78   : > { %p1522_p13 = scmp.lt.u32.totalorder %s1515_s29, %s2183_s1 }
  0x79   : > { %p2228_p4 = pneg %p2227_p2 }
  0x7b   : > { %p1518_p6 = pnand %p1516_p1, %p2228_p4 }
  0x7d   : > { %p1519_p11 = pneg %p1518_p6 }
  0x7f   : > { %p1524_p3 = pnand %p1522_p13, %p1519_p11 }
  0x81   : > { %1527 = shalt.err (!%p1524_p3)
}
  0x82   : > { %s1528_s18 = scalar_lea.vmem %s224_s13, 256  ;;  %p2229_p0 = pmov %p2228_p4 }
  0x83   : > { %p1529_p7 = scmp.ne.s32.totalorder %s224_s13, %s1528_s18  ;;  %p1536_p10 = scmp.lt.s32.totalorder %s224_s13, %s224_s13 }
  0x84   : > { %p1537_p5 = scmp.lt.s32.totalorder %s1528_s18, %s1528_s18 }
  0x85   : > { %p1531_p8 = pnand %p1529_p7, %p2229_p0 }
  0x86   : > { %p1538_p12 = por %p1537_p5, %p1536_p10 }
  0x87   : > { %p1532_p9 = pneg %p1531_p8 }
  0x89   : > { %p1539_p1 = pnand %p1538_p12, %p1532_p9 }
  0x8b   : > { %1542 = shalt.err (!%p1539_p1)
}
  0x8c   : > { %s2230_s2 = smov 8   ;;  %s2231_s30 = smov 128  }
  0x8d   : > { %1356 = dma.hbm_to_vmem [thread:$0]  (!%p2227_p2), %s2183_s1, 256, %s224_s13, [#allocation7], %s2231_s30, %s2231_s30, %s2230_s2  }
  0x8e   : > { %s1190_s20 = sshll.u32 %s1647_s24, 6  ;;  %s290_s0 = scalar_lea.vmem [#allocation10], %s1168_s28 }
  0x8f   : > { %s298_s16 = sshll.u32 %s290_s0, 4  ;;  %s296_s15 = scalar_lea.hbm %s2187_s5, %s1190_s20  ;;  %s299_s16 = int_to_ptr.vmem [resolvable:$true] %s298_s16 }
  0x90   : > { %s1543_s29 = scalar_lea.hbm %s296_s15, 64  ;;  %p2232_p12 = scmp.ne.s32.totalorder %s2223_s12, 0 }
  0x91   : > { %p1544_p5 = scmp.ne.s32.totalorder %s296_s15, %s1543_s29  ;;  %s1548_s18 = scalar_lea.hbm %s2187_s5, 192 }
  0x92   : > { %p1549_p2 = scmp.lt.u32.totalorder %s296_s15, %s2187_s5  ;;  %p1550_p11 = scmp.lt.u32.totalorder %s1548_s18, %s1543_s29 }
  0x93   : > { %p1546_p4 = pnand %p1544_p5, %p2232_p12  ;;  %p1552_p3 = scmp.lt.u32.totalorder %s1543_s29, %s296_s15 }
  0x94   : > { %p1551_p13 = por %p1550_p11, %p1549_p2 }
  0x95   : > { %p1547_p6 = pneg %p1546_p4 }
  0x96   : > { %p1553_p7 = por %p1552_p3, %p1551_p13 }
  0x98   : > { %p1554_p0 = pnand %p1553_p7, %p1547_p6 }
  0x9a   : > { %1557 = shalt.err (!%p1554_p0)
}
  0x9b   : > { %s1558_s13 = scalar_lea.vmem %s299_s16, 64  ;;  %s1657_s28 = smov [#allocation10]  }
  0x9c   : > { %p1559_p8 = scmp.ne.s32.totalorder %s299_s16, %s1558_s13  ;;  %s1563_s2 = sshll.u32 %s1657_s28, 4  ;;  %s1564_s2 = int_to_ptr.vmem [resolvable:$false] %s1563_s2 }
  0x9d   : > { %s1565_s30 = scalar_lea.vmem %s1564_s2, 128  ;;  %p1566_p1 = scmp.lt.s32.totalorder %s299_s16, %s1564_s2 }
  0x9e   : > { %p1561_p9 = pnand %p1559_p8, %p2232_p12  ;;  %p1567_p5 = scmp.lt.s32.totalorder %s1565_s30, %s1558_s13 }
  0xa0   : > { %p1562_p10 = pneg %p1561_p9  ;;  %p1568_p4 = por %p1567_p5, %p1566_p1 }
  0xa2   : > { %p1569_p2 = pnand %p1568_p4, %p1562_p10 }
  0xa4   : > { %1572 = shalt.err (!%p1569_p2)
}
  0xa5   : > { %p2233_p11 = scmp.ne.s32.totalorder %s2221_s19, 0  ;;  %p2234_p6 = scmp.ne.s32.totalorder %s2216_s11, 0 }
  0xa6   : > { %p2235_p13 = scmp.eq.s32.totalorder (!%p2234_p6), %s1719_s25, 0 }
  0xa7   : > { %1366 = dma.hbm_to_vmem [thread:$0]  (!%p2233_p11), %s296_s15, 64, %s299_s16, %s1822_s17  }
  0xa8   : > { %307 = sbr.rel (%p2234_p6) target bundleno = 682 (0x2aa), region = 44 }
  0xaf   : > { %1618 = dma.done.wait (%p2235_p13), [#allocation4], 256   ;;  %p2236_p12 = pmov %p2235_p13 }
  0xb1   : > { %1620 = vsyncadd (%p2236_p12), [#allocation4], 4294967040  ;;  %p2237_p3 = pmov %p2236_p12 }
  0xb3   : > { %1622 = dma.done.wait (%p2237_p3), [#allocation7], 256   ;;  %p2238_p7 = pmov %p2237_p3 }
  0xb4   : > { %s317_s12 = sand.u32 1, %s1719_s25   ;;  %s1944_s19 = sand.u32 1, %s1639_s22  }
  0xb5   : > { %1624 = vsyncadd (%p2238_p7), [#allocation7], 4294967040  ;;  %s1174_s11 = sshll.u32 %s1944_s19, 9  ;;  %s318_s17 = scalar_lea.sflag [#allocation4], %s317_s12 }
  0xb6   : > { %s1947_s20 = scalar_lea.vmem [#allocation8], %s1174_s11  ;;  %p2239_p0 = scmp.ne.s32.totalorder %s2212_s8, 0 }
  0xb8   : > { %1626 = dma.done.wait (%p2239_p0), %s318_s17, 16448  }
  0xb9   : > { %1628 = vsyncadd (%p2239_p0), %s318_s17, 4294950848  ;;  %s1176_s0 = sshll.u32 %s1944_s19, 2  ;;  %s1177_s16 = sshll.u32 %s1944_s19, 4 }
  0xba   : > { %p382_p8 = scmp.lt.s32.totalorder %s1719_s25, 2  ;;  %s1962_s27 = scalar_lea.vmem [#allocation9], %s1174_s11 }
  0xbb   : > { %s1964_s18 = scalar_lea.vmem [#allocation10], %s1176_s0  ;;  %s1966_s8 = scalar_lea.vmem [#allocation11], %s1177_s16 }
  0xbc   : > { %s383_s7 = scalar_select %p382_p8, %s1719_s25, 2 }
  0xbd   : > { %p2240_p9 = scmp.ne.s32.totalorder %s1719_s25, 0 }
  0xbe   : > { %s1178_s26 = sshll.u32 %s383_s7, 2  ;;  %v390_v0 = vld [vmem:[#allocation3] sm:$0xff] (!%p2240_p9)  ;;  %v391_v1 = vld [vmem:[#allocation3 + $0x8] sm:$0xff] (!%p2240_p9) }
  0xbf   : > { %s1960_s14 = scalar_lea.vmem %s2186_s4, %s1178_s26  ;;  %389 = sbr.rel (%p2240_p9) target bundleno = 198 (0xc6), region = 68  ;;  %392 = vst [vmem:[#allocation2] sm:$0xff] (!%p2240_p9), %v390_v0  ;;  %393 = vst [vmem:[#allocation2 + $0x8] sm:$0xff] (!%p2240_p9), %v391_v1 }
  0xc6 PF: > { %v1970_v2 = vld [vmem:[#allocation2] sm:$0xff]  ;;  %v1972_v3 = vld [vmem:[#allocation2 + $0x8] sm:$0xff]  ;;  %vm398_vm0 = vcmask 130048   ;;  %v481_v6 = vld [vmem:[%s1947_s20 + $0x8] sm:$0xff]  ;;  %v1658_v8 = vmov 0.0   ;;  %s1185_s3 = sshll.u32 %s1719_s25, 7 }
  0xc7   : > { %v396_v4 = vld [vmem:[#allocation6] sm:$0xff]  ;;  %v1202_v5 = vpack.c.bf16 %v1972_v3, %v1970_v2  ;;  %v485_v7 = vld [vmem:[%s1947_s20 + $0x28] sm:$0xff]  ;;  %608 = vmatprep.mubr.f32.mxu1 %v1658_v8  ;;  %v397_v9 = vld [vmem:[#allocation6 + $0x8] sm:$0xff]  ;;  %s1013_s10 = sshll.u32 %s1966_s8, 4  ;;  %s2136_s2 = scalar_lea.hbm %s2188_s6, %s1185_s3  ;;  %s2138_s10 = int_to_ptr.vmem [resolvable:$true] %s1013_s10 }
  0xc8   : > { %1199 = vmatprep.mubr.msk.f32.mxu0 %vm398_vm0, %v396_v4  ;;  %v1206_v10 = vpack.c.bf16 %v485_v7, %v481_v6  ;;  %v480_v11 = vld [vmem:[%s1947_s20] sm:$0xff]  ;;  %v483_v13 = vld [vmem:[%s1947_s20 + $0x18] sm:$0xff]  ;;  %v482_v16 = vld [vmem:[%s1947_s20 + $0x10] sm:$0xff]  ;;  %s1001_s30 = scalar_lea.sflag [#allocation5], %s1944_s19  ;;  %s1573_s12 = scalar_lea.vmem %s2138_s10, 256 }
  0xc9   : > { %v484_v12 = vld [vmem:[%s1947_s20 + $0x20] sm:$0xff]  ;;  %1203 = vmatprep.subr.bf16.mxu0 %v1202_v5  ;;  %v487_v15 = vld [vmem:[%s1947_s20 + $0x38] sm:$0xff]  ;;  %v486_v17 = vld [vmem:[%s1947_s20 + $0x30] sm:$0xff]  ;;  %p1574_p10 = scmp.ne.s32.totalorder %s2138_s10, %s1573_s12  ;;  %p2241_p1 = scmp.ne.s32.totalorder %s2213_s9, 0 }
  0xca   : > { %v1208_v14 = vpack.c.bf16 %v484_v12, %v480_v11  ;;  %1205 = vmatpush3.bf16.msra.mxu0 %v1202_v5  ;;  %1207 = vmatprep.subr.bf16.mxu1 %v1206_v10  ;;  %v1238_v18 = vpack.c.bf16 %v487_v15, %v483_v13  ;;  %v1240_v19 = vpack.c.bf16 %v486_v17, %v482_v16  ;;  %v489_v20 = vld [vmem:[%s1947_s20 + $0x48] sm:$0xff]  ;;  %v488_v22 = vld [vmem:[%s1947_s20 + $0x40] sm:$0xff]  ;;  %v491_v25 = vld [vmem:[%s1947_s20 + $0x58] sm:$0xff]  ;;  %s1659_s25 = smov [#allocation11]  }
  0xcb   : > { %v493_v21 = vld [vmem:[%s1947_s20 + $0x68] sm:$0xff]  ;;  %v492_v24 = vld [vmem:[%s1947_s20 + $0x60] sm:$0xff]  ;;  %v495_v26 = vld [vmem:[%s1947_s20 + $0x78] sm:$0xff]  ;;  %p1575_p5 = pnand %p1574_p10, %p2241_p1  ;;  %s1577_s11 = sshll.u32 %s1659_s25, 4  ;;  %s1578_s11 = int_to_ptr.vmem [resolvable:$false] %s1577_s11 }
  0xcc   : > { %1209 = vmatpush1.bf16.msra.mxu1 %v1208_v14  ;;  %v1210_v23 = vpack.c.bf16 %v493_v21, %v489_v20  ;;  %1239 = vmatprep.subr.bf16.mxu0 %v1238_v18  ;;  %v1212_v27 = vpack.c.bf16 %v492_v24, %v488_v22  ;;  %v1242_v28 = vpack.c.bf16 %v495_v26, %v491_v25  ;;  %v490_v29 = vld [vmem:[%s1947_s20 + $0x50] sm:$0xff]  ;;  %v497_v31 = vld [vmem:[%s1947_s20 + $0x88] sm:$0xff]  ;;  %v496_v33 = vld [vmem:[%s1947_s20 + $0x80] sm:$0xff]  ;;  %s1579_s17 = scalar_lea.vmem %s1578_s11, 512  ;;  %p1580_p2 = scmp.lt.s32.totalorder %s2138_s10, %s1578_s11 }
  0xcd   : > { %v494_v30 = vld [vmem:[%s1947_s20 + $0x70] sm:$0xff]  ;;  %1200 = vmatmul.mubr.msk.f32.vlgmr.msra.gmra.mrb[0].mxu0 %vm398_vm0, %v397_v9  ;;  %v501_v32 = vld [vmem:[%s1947_s20 + $0xa8] sm:$0xff]  ;;  %v500_v34 = vld [vmem:[%s1947_s20 + $0xa0] sm:$0xff]  ;;  %p1576_p4 = pneg %p1575_p5  ;;  %p1581_p11 = scmp.lt.s32.totalorder %s1579_s17, %s1573_s12 }
  0xce   : > { %1211 = vmatprep.subr.bf16.mxu1 %v1210_v23  ;;  %1241 = vmatpush1.bf16.msra.mxu0 %v1240_v19  ;;  %v1244_v35 = vpack.c.bf16 %v494_v30, %v490_v29  ;;  %v1214_v36 = vpack.c.bf16 %v501_v32, %v497_v31  ;;  %v499_v37 = vld [vmem:[%s1947_s20 + $0x98] sm:$0xff]  ;;  %v498_v39 = vld [vmem:[%s1947_s20 + $0x90] sm:$0xff]  ;;  %v1216_v40 = vpack.c.bf16 %v500_v34, %v496_v33  ;;  %v505_v43 = vld [vmem:[%s1947_s20 + $0xc8] sm:$0xff] }
  0xcf   : > { %v503_v38 = vld [vmem:[%s1947_s20 + $0xb8] sm:$0xff]  ;;  %685 = vmatprep.mubr.f32.mxu0 %v1658_v8  ;;  %1243 = vmatprep.subr.bf16.mxu0 %v1242_v28  ;;  %v502_v42 = vld [vmem:[%s1947_s20 + $0xb0] sm:$0xff]  ;;  %v509_v44 = vld [vmem:[%s1947_s20 + $0xe8] sm:$0xff]  ;;  %p1582_p6 = por %p1581_p11, %p1580_p2 }
  0xd0   : > { %1213 = vmatpush1.bf16.msra.mxu1 %v1212_v27  ;;  %v1246_v41 = vpack.c.bf16 %v503_v38, %v499_v37  ;;  %v1218_v45 = vpack.c.bf16 %v509_v44, %v505_v43  ;;  %v504_v46 = vld [vmem:[%s1947_s20 + $0xc0] sm:$0xff]  ;;  %v507_v48 = vld [vmem:[%s1947_s20 + $0xd8] sm:$0xff]  ;;  %v1248_v50 = vpack.c.bf16 %v502_v42, %v498_v39  ;;  %v513_v51 = vld [vmem:[%s1947_s20 + $0x108] sm:$0xff] }
  0xd1   : > { %1215 = vmatprep.subr.bf16.mxu1 %v1214_v36  ;;  %v508_v47 = vld [vmem:[%s1947_s20 + $0xe0] sm:$0xff]  ;;  %v511_v49 = vld [vmem:[%s1947_s20 + $0xf8] sm:$0xff]  ;;  %v517_v52 = vld [vmem:[%s1947_s20 + $0x128] sm:$0xff]  ;;  %p1583_p13 = pnand %p1582_p6, %p1576_p4 }
  0xd2   : > { %1245 = vmatpush1.bf16.msra.mxu0 %v1244_v35  ;;  %v1220_v53 = vpack.c.bf16 %v508_v47, %v504_v46  ;;  %v1250_v54 = vpack.c.bf16 %v511_v49, %v507_v48  ;;  %v506_v55 = vld [vmem:[%s1947_s20 + $0xd0] sm:$0xff]  ;;  %v512_v57 = vld [vmem:[%s1947_s20 + $0x100] sm:$0xff]  ;;  %v1222_v58 = vpack.c.bf16 %v517_v52, %v513_v51  ;;  %v515_v60 = vld [vmem:[%s1947_s20 + $0x118] sm:$0xff] }
  0xd3   : > { %1247 = vmatprep.subr.bf16.mxu0 %v1246_v41  ;;  %v510_v56 = vld [vmem:[%s1947_s20 + $0xf0] sm:$0xff]  ;;  %v516_v59 = vld [vmem:[%s1947_s20 + $0x120] sm:$0xff]  ;;  %v519_v61 = vld [vmem:[%s1947_s20 + $0x138] sm:$0xff] }
  0xd4   : > { %1217 = vmatpush1.bf16.msra.mxu1 %v1216_v40  ;;  %v521_v62 = vld [vmem:[%s1947_s20 + $0x148] sm:$0xff]  ;;  %v1252_v0 = vpack.c.bf16 %v510_v56, %v506_v55  ;;  %v1224_v1 = vpack.c.bf16 %v516_v59, %v512_v57  ;;  %v1254_v4 = vpack.c.bf16 %v519_v61, %v515_v60  ;;  %v514_v5 = vld [vmem:[%s1947_s20 + $0x110] sm:$0xff]  ;;  %v520_v7 = vld [vmem:[%s1947_s20 + $0x140] sm:$0xff] }
  0xd5   : > { %1219 = vmatprep.subr.bf16.mxu1 %v1218_v45  ;;  %v525_v63 = vld [vmem:[%s1947_s20 + $0x168] sm:$0xff]  ;;  %v518_v6 = vld [vmem:[%s1947_s20 + $0x130] sm:$0xff]  ;;  %v524_v10 = vld [vmem:[%s1947_s20 + $0x160] sm:$0xff] }
  0xd6   : > { %1249 = vmatpush1.bf16.msra.mxu0 %v1248_v50  ;;  %v1226_v9 = vpack.c.bf16 %v525_v63, %v521_v62  ;;  %v523_v11 = vld [vmem:[%s1947_s20 + $0x158] sm:$0xff]  ;;  %v529_v13 = vld [vmem:[%s1947_s20 + $0x188] sm:$0xff]  ;;  %v1256_v15 = vpack.c.bf16 %v518_v6, %v514_v5  ;;  %v1228_v16 = vpack.c.bf16 %v524_v10, %v520_v7  ;;  %v522_v18 = vld [vmem:[%s1947_s20 + $0x150] sm:$0xff] }
  0xd7   : > { %1251 = vmatprep.subr.bf16.mxu0 %v1250_v54  ;;  %v527_v12 = vld [vmem:[%s1947_s20 + $0x178] sm:$0xff]  ;;  %v533_v14 = vld [vmem:[%s1947_s20 + $0x1a8] sm:$0xff]  ;;  %v526_v19 = vld [vmem:[%s1947_s20 + $0x170] sm:$0xff] }
  0xd8   : > { %1221 = vmatpush1.bf16.msra.mxu1 %v1220_v53  ;;  %v1258_v17 = vpack.c.bf16 %v527_v12, %v523_v11  ;;  %v528_v20 = vld [vmem:[%s1947_s20 + $0x180] sm:$0xff]  ;;  %v1230_v21 = vpack.c.bf16 %v533_v14, %v529_v13  ;;  %v531_v23 = vld [vmem:[%s1947_s20 + $0x198] sm:$0xff]  ;;  %v537_v25 = vld [vmem:[%s1947_s20 + $0x1c8] sm:$0xff]  ;;  %v1260_v27 = vpack.c.bf16 %v526_v19, %v522_v18 }
  0xd9   : > { %1223 = vmatprep.subr.bf16.mxu1 %v1222_v58  ;;  %v532_v22 = vld [vmem:[%s1947_s20 + $0x1a0] sm:$0xff]  ;;  %v535_v24 = vld [vmem:[%s1947_s20 + $0x1b8] sm:$0xff]  ;;  %v541_v26 = vld [vmem:[%s1947_s20 + $0x1e8] sm:$0xff] }
  0xda   : > { %1253 = vmatpush1.bf16.msra.mxu0 %v1252_v0  ;;  %v1232_v28 = vpack.c.bf16 %v532_v22, %v528_v20  ;;  %v1262_v29 = vpack.c.bf16 %v535_v24, %v531_v23  ;;  %v530_v30 = vld [vmem:[%s1947_s20 + $0x190] sm:$0xff]  ;;  %v536_v32 = vld [vmem:[%s1947_s20 + $0x1c0] sm:$0xff]  ;;  %v1234_v33 = vpack.c.bf16 %v541_v26, %v537_v25  ;;  %v539_v35 = vld [vmem:[%s1947_s20 + $0x1d8] sm:$0xff] }
  0xdb   : > { %1255 = vmatprep.subr.bf16.mxu0 %v1254_v4  ;;  %v534_v31 = vld [vmem:[%s1947_s20 + $0x1b0] sm:$0xff]  ;;  %v540_v34 = vld [vmem:[%s1947_s20 + $0x1e0] sm:$0xff]  ;;  %v543_v36 = vld [vmem:[%s1947_s20 + $0x1f8] sm:$0xff] }
  0xdc   : > { %1225 = vmatpush1.bf16.msra.mxu1 %v1224_v1  ;;  %v729_v37 = vld [vmem:[%s1962_s27 + $0x8] sm:$0xff]  ;;  %v1264_v39 = vpack.c.bf16 %v534_v31, %v530_v30  ;;  %v1236_v40 = vpack.c.bf16 %v540_v34, %v536_v32  ;;  %v1266_v41 = vpack.c.bf16 %v543_v36, %v539_v35  ;;  %v538_v42 = vld [vmem:[%s1947_s20 + $0x1d0] sm:$0xff]  ;;  %v731_v44 = vld [vmem:[%s1962_s27 + $0x18] sm:$0xff] }
  0xdd   : > { %1227 = vmatprep.subr.bf16.mxu1 %v1226_v9  ;;  %v733_v38 = vld [vmem:[%s1962_s27 + $0x28] sm:$0xff]  ;;  %v542_v43 = vld [vmem:[%s1947_s20 + $0x1f0] sm:$0xff]  ;;  %v735_v46 = vld [vmem:[%s1962_s27 + $0x38] sm:$0xff] }
  0xde   : > { %1257 = vmatpush1.bf16.msra.mxu0 %v1256_v15  ;;  %v1270_v45 = vpack.c.bf16 %v733_v38, %v729_v37  ;;  %v728_v47 = vld [vmem:[%s1962_s27] sm:$0xff]  ;;  %v737_v49 = vld [vmem:[%s1962_s27 + $0x48] sm:$0xff]  ;;  %v1268_v51 = vpack.c.bf16 %v542_v43, %v538_v42  ;;  %v1302_v52 = vpack.c.bf16 %v735_v46, %v731_v44  ;;  %v730_v54 = vld [vmem:[%s1962_s27 + $0x10] sm:$0xff] }
  0xdf   : > { %1259 = vmatprep.subr.bf16.mxu0 %v1258_v17  ;;  %v732_v48 = vld [vmem:[%s1962_s27 + $0x20] sm:$0xff]  ;;  %v741_v50 = vld [vmem:[%s1962_s27 + $0x68] sm:$0xff]  ;;  %v734_v55 = vld [vmem:[%s1962_s27 + $0x30] sm:$0xff] }
  0xe0   : > { %1229 = vmatpush1.bf16.msra.mxu1 %v1228_v16  ;;  %v1272_v53 = vpack.c.bf16 %v732_v48, %v728_v47  ;;  %v739_v56 = vld [vmem:[%s1962_s27 + $0x58] sm:$0xff]  ;;  %v1274_v57 = vpack.c.bf16 %v741_v50, %v737_v49  ;;  %v736_v59 = vld [vmem:[%s1962_s27 + $0x40] sm:$0xff]  ;;  %v745_v61 = vld [vmem:[%s1962_s27 + $0x88] sm:$0xff]  ;;  %v1304_v63 = vpack.c.bf16 %v734_v55, %v730_v54 }
  0xe1   : > { %1231 = vmatprep.subr.bf16.mxu1 %v1230_v21  ;;  %v743_v58 = vld [vmem:[%s1962_s27 + $0x78] sm:$0xff]  ;;  %v740_v60 = vld [vmem:[%s1962_s27 + $0x60] sm:$0xff]  ;;  %v749_v62 = vld [vmem:[%s1962_s27 + $0xa8] sm:$0xff] }
  0xe2   : > { %1261 = vmatpush1.bf16.msra.mxu0 %v1260_v27  ;;  %v1306_v0 = vpack.c.bf16 %v743_v58, %v739_v56  ;;  %v1276_v1 = vpack.c.bf16 %v740_v60, %v736_v59  ;;  %v738_v4 = vld [vmem:[%s1962_s27 + $0x50] sm:$0xff]  ;;  %v747_v6 = vld [vmem:[%s1962_s27 + $0x98] sm:$0xff]  ;;  %v1278_v7 = vpack.c.bf16 %v749_v62, %v745_v61  ;;  %v744_v10 = vld [vmem:[%s1962_s27 + $0x80] sm:$0xff] }
  0xe3   : > { %1263 = vmatprep.subr.bf16.mxu0 %v1262_v29  ;;  %v742_v5 = vld [vmem:[%s1962_s27 + $0x70] sm:$0xff]  ;;  %v751_v9 = vld [vmem:[%s1962_s27 + $0xb8] sm:$0xff]  ;;  %v748_v11 = vld [vmem:[%s1962_s27 + $0xa0] sm:$0xff] }
  0xe4   : > { %1233 = vmatpush1.bf16.msra.mxu1 %v1232_v28  ;;  %v753_v12 = vld [vmem:[%s1962_s27 + $0xc8] sm:$0xff]  ;;  %v1308_v14 = vpack.c.bf16 %v742_v5, %v738_v4  ;;  %v1310_v15 = vpack.c.bf16 %v751_v9, %v747_v6  ;;  %v1280_v16 = vpack.c.bf16 %v748_v11, %v744_v10  ;;  %v746_v17 = vld [vmem:[%s1962_s27 + $0x90] sm:$0xff]  ;;  %v755_v19 = vld [vmem:[%s1962_s27 + $0xd8] sm:$0xff] }
  0xe5   : > { %1235 = vmatprep.subr.bf16.mxu1 %v1234_v33  ;;  %v757_v13 = vld [vmem:[%s1962_s27 + $0xe8] sm:$0xff]  ;;  %v750_v18 = vld [vmem:[%s1962_s27 + $0xb0] sm:$0xff]  ;;  %v752_v21 = vld [vmem:[%s1962_s27 + $0xc0] sm:$0xff] }
  0xe6   : > { %1265 = vmatpush1.bf16.msra.mxu0 %v1264_v39  ;;  %v1282_v20 = vpack.c.bf16 %v757_v13, %v753_v12  ;;  %v756_v22 = vld [vmem:[%s1962_s27 + $0xe0] sm:$0xff]  ;;  %v761_v23 = vld [vmem:[%s1962_s27 + $0x108] sm:$0xff]  ;;  %v1312_v25 = vpack.c.bf16 %v750_v18, %v746_v17  ;;  %v754_v28 = vld [vmem:[%s1962_s27 + $0xd0] sm:$0xff]  ;;  %v700_v17 = vlaneseq }
  0xe7   : > { %1267 = vmatprep.subr.bf16.mxu0 %v1266_v41  ;;  %v765_v24 = vld [vmem:[%s1962_s27 + $0x128] sm:$0xff]  ;;  %v1284_v27 = vpack.c.bf16 %v756_v22, %v752_v21  ;;  %v758_v29 = vld [vmem:[%s1962_s27 + $0xf0] sm:$0xff]  ;;  %v763_v30 = vld [vmem:[%s1962_s27 + $0x118] sm:$0xff] }
  0xe8   : > { %1237 = vmatpush1.bf16.msra.mxu1 %v1236_v40  ;;  %v767_v31 = vld [vmem:[%s1962_s27 + $0x138] sm:$0xff]  ;;  %v760_v32 = vld [vmem:[%s1962_s27 + $0x100] sm:$0xff]  ;;  %v769_v34 = vld [vmem:[%s1962_s27 + $0x148] sm:$0xff]  ;;  %v1316_v36 = vpack.c.bf16 %v758_v29, %v754_v28  ;;  %v701_v18 = vshrl.u32 %v700_v17, 7 }
  0xe9   : > { %1271 = vmatprep.subr.bf16.mxu1 %v1270_v45  ;;  %v764_v33 = vld [vmem:[%s1962_s27 + $0x120] sm:$0xff]  ;;  %v773_v35 = vld [vmem:[%s1962_s27 + $0x168] sm:$0xff]  ;;  %v1318_v37 = vpack.c.bf16 %v767_v31, %v763_v30  ;;  %v762_v39 = vld [vmem:[%s1962_s27 + $0x110] sm:$0xff] }
  0xea   : > { %1269 = vmatpush1.bf16.msra.mxu0 %v1268_v51  ;;  %v1288_v38 = vpack.c.bf16 %v764_v33, %v760_v32  ;;  %v766_v40 = vld [vmem:[%s1962_s27 + $0x130] sm:$0xff]  ;;  %v771_v41 = vld [vmem:[%s1962_s27 + $0x158] sm:$0xff]  ;;  %v1290_v42 = vpack.c.bf16 %v773_v35, %v769_v34  ;;  %v768_v44 = vld [vmem:[%s1962_s27 + $0x140] sm:$0xff]  ;;  %v710_v21 = vsub.s32 2, %v701_v18 }
  0xeb   : > { %609 = vmatmul.mubr.f32.vlgmr.msra.gmra.mrb[0].mxu1 %v1970_v2  ;;  %1303 = vmatprep.subr.bf16.mxu0 %v1302_v52  ;;  %v775_v43 = vld [vmem:[%s1962_s27 + $0x178] sm:$0xff]  ;;  %v772_v45 = vld [vmem:[%s1962_s27 + $0x160] sm:$0xff]  ;;  %v777_v46 = vld [vmem:[%s1962_s27 + $0x188] sm:$0xff]  ;;  %v1320_v48 = vpack.c.bf16 %v766_v40, %v762_v39 }
  0xec   : > { %1273 = vmatpush1.bf16.msra.mxu1 %v1272_v53  ;;  %614 = vmatprep.mubr.f32.mxu1 %v1658_v8  ;;  %v781_v47 = vld [vmem:[%s1962_s27 + $0x1a8] sm:$0xff]  ;;  %v1322_v49 = vpack.c.bf16 %v775_v43, %v771_v41  ;;  %v1292_v50 = vpack.c.bf16 %v772_v45, %v768_v44  ;;  %v770_v51 = vld [vmem:[%s1962_s27 + $0x150] sm:$0xff]  ;;  %v779_v53 = vld [vmem:[%s1962_s27 + $0x198] sm:$0xff] }
  0xed   : > { %1275 = vmatprep.subr.bf16.mxu1 %v1274_v57  ;;  %686 = vmatmul.mubr.f32.vlgmr.msra.gmra.mrb[2].mxu0 %v1970_v2  ;;  %v759_v2 = vld [vmem:[%s1962_s27 + $0xf8] sm:$0xff]  ;;  %v774_v52 = vld [vmem:[%s1962_s27 + $0x170] sm:$0xff]  ;;  %v1294_v54 = vpack.c.bf16 %v781_v47, %v777_v46  ;;  %v776_v56 = vld [vmem:[%s1962_s27 + $0x180] sm:$0xff] }
  0xee   : > { %1305 = vmatpush1.bf16.msra.mxu0 %v1304_v63  ;;  %691 = vmatprep.mubr.f32.mxu0 %v1658_v8  ;;  %v1314_v26 = vpack.c.bf16 %v759_v2, %v755_v19  ;;  %v783_v55 = vld [vmem:[%s1962_s27 + $0x1b8] sm:$0xff]  ;;  %v780_v57 = vld [vmem:[%s1962_s27 + $0x1a0] sm:$0xff]  ;;  %v785_v58 = vld [vmem:[%s1962_s27 + $0x1c8] sm:$0xff]  ;;  %v1324_v60 = vpack.c.bf16 %v774_v52, %v770_v51  ;;  %v702_v19 = vsub.s32 0, %v701_v18  ;;  %v706_v2 = vsub.s32 1, %v701_v18 }
  0xef   : > { %615 = vmatmul.mubr.f32.gmra.mrb[2].mxu1 %v1972_v3  ;;  %1307 = vmatprep.subr.bf16.mxu0 %v1306_v0  ;;  %v789_v59 = vld [vmem:[%s1962_s27 + $0x1e8] sm:$0xff]  ;;  %v1326_v61 = vpack.c.bf16 %v783_v55, %v779_v53  ;;  %v1296_v62 = vpack.c.bf16 %v780_v57, %v776_v56  ;;  %v778_v63 = vld [vmem:[%s1962_s27 + $0x190] sm:$0xff]  ;;  %v791_v5 = vld [vmem:[%s1962_s27 + $0x1f8] sm:$0xff] }
  0xf0   : > { %1277 = vmatpush1.bf16.msra.mxu1 %v1276_v1  ;;  %878 = vmatprep.mubr.f32.mxu1 %v1658_v8  ;;  %v782_v0 = vld [vmem:[%s1962_s27 + $0x1b0] sm:$0xff]  ;;  %v787_v1 = vld [vmem:[%s1962_s27 + $0x1d8] sm:$0xff]  ;;  %v1298_v4 = vpack.c.bf16 %v789_v59, %v785_v58  ;;  %v784_v6 = vld [vmem:[%s1962_s27 + $0x1c0] sm:$0xff] }
  0xf1   : > { %1279 = vmatprep.subr.bf16.mxu1 %v1278_v7  ;;  %692 = vmatmul.mubr.f32.gmra.mrb[4].mxu0 %v1972_v3  ;;  %v1286_v3 = vpack.c.bf16 %v765_v24, %v761_v23  ;;  %v788_v7 = vld [vmem:[%s1962_s27 + $0x1e0] sm:$0xff]  ;;  %v1328_v9 = vpack.c.bf16 %v782_v0, %v778_v63  ;;  %v1330_v10 = vpack.c.bf16 %v791_v5, %v787_v1  ;;  %v786_v12 = vld [vmem:[%s1962_s27 + $0x1d0] sm:$0xff]  ;;  %v714_v23 = vsub.s32 3, %v701_v18 }
  0xf2   : > { %1309 = vmatpush1.bf16.msra.mxu0 %v1308_v14  ;;  %955 = vmatprep.mubr.f32.mxu0 %v1658_v8  ;;  %v1300_v11 = vpack.c.bf16 %v788_v7, %v784_v6  ;;  %v790_v13 = vld [vmem:[%s1962_s27 + $0x1f0] sm:$0xff] }
  0xf3   : > { %1311 = vmatprep.subr.bf16.mxu0 %v1310_v15  ;;  %v1332_v14 = vpack.c.bf16 %v790_v13, %v786_v12  ;;  %v792_v45 = vld [vmem:[%s1960_s14] sm:$0xf] }
  0xf4   : > { %1281 = vmatpush1.bf16.msra.mxu1 %v1280_v16  ;;  %v797_v46 = vrot.slane %v792_v45, %v702_v19  ;;  %v801_v47 = vrot.slane %v792_v45, %v706_v2  ;;  %v809_v51 = vrot.slane %v792_v45, %v714_v23 }
  0xf5   : > { %1283 = vmatprep.subr.bf16.mxu1 %v1282_v20  ;;  %v698_v20 = vld [vmem:[%s1964_s18] sm:$0xf] }
  0xf6   : > { %1313 = vmatpush1.bf16.msra.mxu0 %v1312_v25  ;;  %v703_v22 = vrot.slane %v698_v20, %v702_v19  ;;  %v707_v24 = vrot.slane %v698_v20, %v706_v2  ;;  %v715_v29 = vrot.slane %v698_v20, %v714_v23 }
  0xf7   : > { %1315 = vmatprep.subr.bf16.mxu0 %v1314_v26  ;;  %v711_v26 = vrot.slane %v698_v20, %v710_v21 }
  0xf8   : > { %1285 = vmatpush1.bf16.msra.mxu1 %v1284_v27 }
  0xf9   : > { %1287 = vmatprep.subr.bf16.mxu1 %v1286_v3 }
  0xfa   : > { %1317 = vmatpush1.bf16.msra.mxu0 %v1316_v36 }
  0xfb   : > { %1319 = vmatprep.subr.bf16.mxu0 %v1318_v37 }
  0xfc   : > { %1289 = vmatpush1.bf16.msra.mxu1 %v1288_v38 }
  0xfd   : > { %1291 = vmatprep.subr.bf16.mxu1 %v1290_v42 }
  0xfe   : > { %1321 = vmatpush1.bf16.msra.mxu0 %v1320_v48  ;;  %v805_v48 = vrot.slane %v792_v45, %v710_v21 }
  0xff   : > { %1323 = vmatprep.subr.bf16.mxu0 %v1322_v49 }
 0x100   : > { %1293 = vmatpush1.bf16.msra.mxu1 %v1292_v50 }
 0x101   : > { %1295 = vmatprep.subr.bf16.mxu1 %v1294_v54 }
 0x102   : > { %1325 = vmatpush1.bf16.msra.mxu0 %v1324_v60 }
 0x103   : > { %1327 = vmatprep.subr.bf16.mxu0 %v1326_v61 }
 0x104   : > { %1297 = vmatpush1.bf16.msra.mxu1 %v1296_v62 }
 0x105   : > { %1299 = vmatprep.subr.bf16.mxu1 %v1298_v4 }
 0x106   : > { %1329 = vmatpush1.bf16.msra.mxu0 %v1328_v9 }
 0x107   : > { %1331 = vmatprep.subr.bf16.mxu0 %v1330_v10 }
 0x108   : > { %1301 = vmatpush1.bf16.msra.mxu1 %v1300_v11 }
 0x10a   : > { %1333 = vmatpush1.bf16.msra.mxu0 %v1332_v14 }
 0x1a0   : > { %v1201_v15 = vpop.f32.mrb[0].mxu0 }
 0x1a1   : > { %v471_v16 = vpop.f32.mrb[1].mxu0 }
 0x1a2   : > { %879 = vmatmul.mubr.f32.vlgmr.msra.gmra.mrb[4].mxu1 %v471_v16  ;;  %956 = vmatmul.mubr.f32.vlgmr.msra.gmra.mrb[6].mxu0 %v471_v16 }
 0x1a3   : > { %884 = vmatprep.mubr.f32.mxu1 %v1658_v8  ;;  %961 = vmatprep.mubr.f32.mxu0 %v1658_v8 }
 0x1a6   : > { %885 = vmatmul.mubr.f32.gmra.mrb[6].mxu1 %v1201_v15  ;;  %962 = vmatmul.mubr.f32.gmra.mrb[8].mxu0 %v1201_v15 }
 0x1be   : > { %v610_v25 = vpop.f32.mrb[0].mxu1 }
 0x1bf   : > { %v720_v27 = vadd.f32 %v703_v22, %v610_v25  ;;  %v612_v28 = vpop.f32.mrb[1].mxu1 }
 0x1c0   : > { %v721_v30 = vadd.f32 %v707_v24, %v612_v28  ;;  %v687_v3 = vpop.f32.mrb[2].mxu0 }
 0x1c1   : > { %v722_v8 = vadd.f32 %v711_v26, %v687_v3  ;;  %v689_v31 = vpop.f32.mrb[3].mxu0 }
 0x1c2   : > { %vm968_vm1 = vcmp.lt.f32.partialorder %v721_v30, %v720_v27  ;;  %v616_v32 = vpop.f32.mrb[2].mxu1  ;;  %v723_v34 = vadd.f32 %v715_v29, %v689_v31 }
 0x1c3   : > { %v970_v33 = vsel %vm968_vm1, %v721_v30, %v720_v27  ;;  %v724_v35 = vadd.f32 %v703_v22, %v616_v32  ;;  %v618_v36 = vpop.f32.mrb[3].mxu1 }
 0x1c4   : > { %vm974_vm2 = vcmp.lt.f32.partialorder %v722_v8, %v970_v33  ;;  %v725_v37 = vadd.f32 %v707_v24, %v618_v36  ;;  %v693_v39 = vpop.f32.mrb[4].mxu0 }
 0x1c5   : > { %v976_v38 = vsel %vm974_vm2, %v722_v8, %v970_v33  ;;  %v726_v40 = vadd.f32 %v711_v26, %v693_v39  ;;  %v695_v41 = vpop.f32.mrb[5].mxu0 }
 0x1c6   : > { %vm980_vm3 = vcmp.lt.f32.partialorder %v723_v34, %v976_v38  ;;  %vm969_vm4 = vcmp.lt.f32.partialorder %v725_v37, %v724_v35  ;;  %v727_v43 = vadd.f32 %v715_v29, %v695_v41 }
 0x1c7   : > { %v971_v42 = vsel %vm969_vm4, %v725_v37, %v724_v35 }
 0x1c8   : > { %vm975_vm5 = vcmp.lt.f32.partialorder %v726_v40, %v971_v42 }
 0x1c9   : > { %v977_v44 = vsel %vm975_vm5, %v726_v40, %v971_v42 }
 0x1ca   : > { %vm981_vm6 = vcmp.lt.f32.partialorder %v727_v43, %v977_v44 }
 0x275   : > { %v880_v49 = vpop.f32.mrb[4].mxu1  ;;  %v957_v50 = vpop.f32.mrb[6].mxu0 }
 0x276   : > { %v881_v52 = vadd.f32 %v880_v49, %v797_v46  ;;  %v882_v53 = vpop.f32.mrb[5].mxu1  ;;  %v959_v54 = vpop.f32.mrb[7].mxu0  ;;  %v958_v56 = vadd.f32 %v957_v50, %v805_v48 }
 0x277   : > { %v883_v55 = vadd.f32 %v882_v53, %v801_v47  ;;  %v960_v58 = vadd.f32 %v959_v54, %v809_v51 }
 0x279   : > { %v972_v57 = vsel %vm968_vm1, %v883_v55, %v881_v52  ;;  %v886_v59 = vpop.f32.mrb[6].mxu1  ;;  %v963_v60 = vpop.f32.mrb[8].mxu0 }
 0x27a   : > { %v978_v61 = vsel %vm974_vm2, %v958_v56, %v972_v57  ;;  %v887_v62 = vadd.f32 %v886_v59, %v797_v46  ;;  %v888_v63 = vpop.f32.mrb[7].mxu1  ;;  %v965_v0 = vpop.f32.mrb[9].mxu0  ;;  %v964_v6 = vadd.f32 %v963_v60, %v805_v48 }
 0x27b   : > { %v982_v1 = vsel %vm980_vm3, %v960_v58, %v978_v61  ;;  %v889_v4 = vadd.f32 %v888_v63, %v801_v47  ;;  %v966_v9 = vadd.f32 %v965_v0, %v809_v51 }
 0x27c   : > { %v1182_v5 = vmul.f32 -1.442695, %v982_v1 }
 0x27d   : > { %v973_v7 = vsel %vm969_vm4, %v889_v4, %v887_v62 }
 0x27e   : > { %1419 = vpow2.f32 %v1182_v5  ;;  %v979_v10 = vsel %vm975_vm5, %v964_v6, %v973_v7 }
 0x27f   : > { %v983_v11 = vsel %vm981_vm6, %v966_v9, %v979_v10 }
 0x280   : > { %v1183_v12 = vmul.f32 -1.442695, %v983_v11 }
 0x282   : > { %1421 = vpow2.f32 %v1183_v12 }
 0x288   : > { %v1420_v13 = vpop.eup %1419 }
 0x289   : > { %v990_v14 = vadd.f32 1.0, %v1420_v13 }
 0x28b   : > { %1423 = vrcp.f32 %v990_v14 }
 0x28c   : > { %v1422_v15 = vpop.eup %1421 }
 0x28d   : > { %v991_v16 = vadd.f32 1.0, %v1422_v15 }
 0x28f   : > { %1425 = vrcp.f32 %v991_v16 }
 0x295   : > { %v1424_v17 = vpop.eup %1423 }
 0x296   : > { %996 = vst [vmem:[#allocation2] sm:$0xff] %v1424_v17  ;;  %998 = vst [vmem:[%s1966_s8] sm:$0xff] %v1424_v17 }
 0x299   : > { %v1426_v18 = vpop.eup %1425 }
 0x29a   : > { %997 = vst [vmem:[#allocation2 + $0x8] sm:$0xff] %v1426_v18  ;;  %999 = vst [vmem:[%s1966_s8 + $0x8] sm:$0xff] %v1426_v18 }
 0x29b   : > { %1586 = shalt.err (!%p1583_p13)
}
 0x29c   : > { %s1587_s20 = scalar_lea.hbm %s2136_s2, 256  ;;  %s1591_s7 = scalar_lea.hbm %s2188_s6, 768 }
 0x29d   : > { %p1588_p12 = scmp.ne.s32.totalorder %s2136_s2, %s1587_s20  ;;  %p1592_p0 = scmp.lt.u32.totalorder %s2136_s2, %s2188_s6 }
 0x29e   : > { %p1593_p8 = scmp.lt.u32.totalorder %s1591_s7, %s1587_s20  ;;  %p1595_p10 = scmp.lt.u32.totalorder %s1587_s20, %s2136_s2 }
 0x29f   : > { %p1589_p3 = pnand %p1588_p12, %p2241_p1 }
 0x2a0   : > { %p1594_p9 = por %p1593_p8, %p1592_p0 }
 0x2a1   : > { %p1590_p7 = pneg %p1589_p3 }
 0x2a2   : > { %p1596_p5 = por %p1595_p10, %p1594_p9 }
 0x2a4   : > { %p1597_p4 = pnand %p1596_p5, %p1590_p7 }
 0x2a6   : > { %1600 = shalt.err (!%p1597_p4)
}
 0x2a7   : > { %s1660_s29 = smov 128   ;;  %s1661_s14 = smov 384  }
 0x2a8   : > { %s1662_s27 = smov 8  }
 0x2a9   : > { %1348 = dma.vmem_to_hbm [thread:$0]  (%p2241_p1), %s2138_s10, 256, %s2136_s2, %s1001_s30, %s1660_s29, %s1661_s14, %s1662_s27  }
 0x2aa PF: > { %s2242_s18 = sld [smem:[#allocation18_spill]]  ;;  %p1376_p2 = scmp.ge.s32.totalorder %s1647_s24, 2 }
 0x2ab   : > { %s1028_s8 = sand.u32 1, %s1635_s21  }
 0x2ac   : > { %s1029_s3 = scalar_lea.sflag [#allocation5], %s1028_s8 }
 0x2b0   : > { %p2243_p11 = scmp.ne.s32.totalorder %s2242_s18, 0 }
 0x2b2   : > { %p1368_p6 = pnand %p1376_p2, %p2243_p11 }
 0x2b4   : > { %1630 = dma.done.wait (!%p1368_p6), %s1029_s3, 256  }
 0x2b5   : > { %1632 = vsyncadd (!%p1368_p6), %s1029_s3, 4294967040  ;;  %s2244_s24 = sld [smem:[#allocation16_spill]]  ;;  %s2245_s13 = sld [smem:[#allocation17_spill]] }
 0x2b6   : > { %s2246_s21 = smov %s1639_s22  ;;  %s2247_s22 = smov %s1643_s23 }
 0x2bb   : > { %p18_p13 = scmp.ge.s32.totalorder %s2244_s24, 5   ;;  %s2248_s23 = smov %s2245_s13 }
 0x2bd   :  { %20 = sbr.rel (!%p18_p13) target bundleno = 9 (0x9), region = 125 }
 0x2c4   :  { %1034 = vsyncpa [#allocation4], 1 }
 0x2c5   :  { %1036 = vsyncpa [#allocation4 + $0x1], 1 }
 0x2c6   :  { %1037 = vsyncpa [#allocation7], 1 }
 0x2c7   :  { %1038 = vsyncpa [#allocation5], 1 }
 0x2c8   :  { %1040 = vsyncpa [#allocation5 + $0x1], 1 }

</bundles_post_ra>
